<compile_context>
chip_gen: v7x
topology: tpu7x:2x2x1
jax: 0.10.0
libtpu: 0.0.40
codegen_flags: <defaults>
</compile_context>

<pallas_src>
import functools

import jax
import jax.numpy as jnp
from jax.experimental import pallas as pl
from jax.experimental.pallas import tpu as pltpu

IN_DIM = 28 * 28          # 784
ENC_DIMS = (128, 64, 12)  # encoder hidden sizes before the latent layer
DEC_DIMS = (12, 64, 128)  # decoder hidden sizes before the output layer
LANE = 128


def _round_up(x, m):
    return (x + m - 1) // m * m


def _autoencoder_kernel(
    x_ref,
    # encoder params (W stored [in, out] bf16, b stored [1, out] f32)
    ew0, eb0, ew1, eb1, ew2, eb2, ew3, eb3,
    # decoder params
    dw0, db0, dw1, db1, dw2, db2, dw3, db3,
    # outputs
    dec_out_ref, enc_out_ref,
):
    """Fused MLP autoencoder forward for one batch tile (all params VMEM-resident)."""

    def linear(h, w_ref, b_ref):
        # bf16 operands on the MXU, f32 accumulation, f32 bias add.
        acc = jnp.dot(h.astype(w_ref.dtype), w_ref[...],
                      preferred_element_type=jnp.float32)
        return acc + b_ref[...].astype(jnp.float32)

    x = x_ref[...]

    # ----- encoder: Linear -> ReLU (x4) -----
    h = jnp.maximum(linear(x, ew0, eb0), 0.0)
    h = jnp.maximum(linear(h, ew1, eb1), 0.0)
    h = jnp.maximum(linear(h, ew2, eb2), 0.0)
    encoded = jnp.maximum(linear(h, ew3, eb3), 0.0)   # lane-padded latent

    # ----- decoder: Linear -> ReLU (x3), Linear -> Tanh -----
    h = jnp.maximum(linear(encoded, dw0, db0), 0.0)
    h = jnp.maximum(linear(h, dw1, db1), 0.0)
    h = jnp.maximum(linear(h, dw2, db2), 0.0)
    decoded = jnp.tanh(linear(h, dw3, db3))

    dec_out_ref[...] = decoded.astype(dec_out_ref.dtype)
    enc_out_ref[...] = encoded.astype(enc_out_ref.dtype)


def init_params(key, latent_dim, dtype=jnp.float32):
    """Deterministic PyTorch-style init: U(-1/sqrt(fan_in), 1/sqrt(fan_in))."""
    enc_sizes = (IN_DIM,) + ENC_DIMS + (latent_dim,)
    dec_sizes = (latent_dim,) + DEC_DIMS + (IN_DIM,)

    def make_layers(key, sizes):
        params = []
        for fan_in, fan_out in zip(sizes[:-1], sizes[1:]):
            key, kw, kb = jax.random.split(key, 3)
            bound = 1.0 / (fan_in ** 0.5)
            # stored as [in, out]  (PyTorch weight is [out, in]; pre-transposed)
            w = jax.random.uniform(kw, (fan_in, fan_out), dtype,
                                   minval=-bound, maxval=bound)
            b = jax.random.uniform(kb, (1, fan_out), dtype,
                                   minval=-bound, maxval=bound)
            params += [w, b]
        return key, params

    key, enc = make_layers(key, enc_sizes)
    key, dec = make_layers(key, dec_sizes)
    return enc, dec


@functools.partial(jax.jit, static_argnames=("latent_dim", "block_batch"))
def autoencoder_forward(x, enc_params, dec_params, latent_dim, block_batch=256):
    """Pallas-backed forward. Returns (reconstruction, encoded) like the nn.Module."""
    batch = x.shape[0]
    compute_dtype = jnp.bfloat16

    # ---- batch tiling: TB multiple of 16 (bf16 sublane packing), batch padded to TB ----
    tb = min(block_batch, _round_up(batch, 16))
    padded_batch = _round_up(batch, tb)
    lat_pad = _round_up(max(latent_dim, LANE), LANE)

    xb = x.astype(compute_dtype)
    if padded_batch != batch:
        xb = jnp.pad(xb, ((0, padded_batch - batch), (0, 0)))

    # ---- cast params: weights bf16 (MXU operands), biases f32 (accurate add) ----
    enc = list(enc_params)
    dec = list(dec_params)
    for i in range(0, len(enc), 2):
        enc[i] = enc[i].astype(compute_dtype)
        enc[i + 1] = enc[i + 1].astype(jnp.float32)
    for i in range(0, len(dec), 2):
        dec[i] = dec[i].astype(compute_dtype)
        dec[i + 1] = dec[i + 1].astype(jnp.float32)

    # ---- lane-pad the latent chain (zero columns / rows -> identical math) ----
    pad_cols = lat_pad - latent_dim
    enc[-2] = jnp.pad(enc[-2], ((0, 0), (0, pad_cols)))   # W_enc3: [12, lat_pad]
    enc[-1] = jnp.pad(enc[-1], ((0, 0), (0, pad_cols)))   # b_enc3: [1, lat_pad]
    dec[0] = jnp.pad(dec[0], ((0, pad_cols), (0, 0)))     # W_dec0: [lat_pad, 12]

    params = enc + dec
    grid = (padded_batch // tb,)

    x_spec = pl.BlockSpec((tb, IN_DIM), lambda i: (i, 0))
    # Full-array blocks with constant index maps: params stay VMEM-resident.
    param_specs = [pl.BlockSpec(p.shape, lambda i: (0, 0)) for p in params]
    dec_spec = pl.BlockSpec((tb, IN_DIM), lambda i: (i, 0))
    enc_spec = pl.BlockSpec((tb, lat_pad), lambda i: (i, 0))

    layer_dims = [(IN_DIM, 128), (128, 64), (64, 12), (12, lat_pad),
                  (lat_pad, 12), (12, 64), (64, 128), (128, IN_DIM)]
    param_bytes = sum(int(p.size) * p.dtype.itemsize for p in params)
    cost = pl.CostEstimate(
        flops=2 * padded_batch * sum(a * b for a, b in layer_dims),
        transcendentals=padded_batch * IN_DIM,  # tanh
        bytes_accessed=(padded_batch * IN_DIM * 2 * 2      # x in + dec out (bf16)
                        + padded_batch * lat_pad * 2       # enc out (bf16)
                        + param_bytes),
    )

    dec_out, enc_out = pl.pallas_call(
        _autoencoder_kernel,
        out_shape=(
            jax.ShapeDtypeStruct((padded_batch, IN_DIM), compute_dtype),
            jax.ShapeDtypeStruct((padded_batch, lat_pad), compute_dtype),
        ),
        grid=grid,
        in_specs=[x_spec] + param_specs,
        out_specs=(dec_spec, enc_spec),
        compiler_params=pltpu.CompilerParams(
            dimension_semantics=("parallel",),   # megacore sharding on v7x
            vmem_limit_bytes=32 << 20,
        ),
        cost_estimate=cost,
    )(xb, *params)

    dec_out = dec_out[:batch].astype(x.dtype)
    enc_out = enc_out[:batch, :latent_dim].astype(x.dtype)
    return dec_out, enc_out


def reference_forward(x, enc_params, dec_params, compute_dtype=jnp.bfloat16):
    """Pure-JAX reference with the same bf16-operand / f32-accumulation semantics."""
    def lin(h, w, b):
        return (jnp.dot(h.astype(compute_dtype), w.astype(compute_dtype),
                        preferred_element_type=jnp.float32)
                + b.astype(jnp.float32))

    h = x
    for i in range(0, len(enc_params), 2):
        h = jnp.maximum(lin(h, enc_params[i], enc_params[i + 1]), 0.0)
    encoded = h
    for i in range(0, len(dec_params) - 2, 2):
        h = jnp.maximum(lin(h, dec_params[i], dec_params[i + 1]), 0.0)
    decoded = jnp.tanh(lin(h, dec_params[-2], dec_params[-1]))
    return decoded, encoded


if __name__ == "__main__":
    latent_dim = 4
    batch = 8

    key = jax.random.PRNGKey(0)
    key, kx = jax.random.split(key)
    x = jax.random.normal(kx, (batch, IN_DIM), jnp.float32)

    enc_params, dec_params = init_params(key, latent_dim)

    dec_out, enc_out = autoencoder_forward(x, enc_params, dec_params, latent_dim)
    jax.block_until_ready((dec_out, enc_out))

    ref_dec, ref_enc = reference_forward(x, enc_params, dec_params)

    assert dec_out.shape == (batch, IN_DIM)
    assert enc_out.shape == (batch, latent_dim)
    # bf16 operands -> relaxed tolerance vs the bf16-matched reference.
    assert jnp.allclose(dec_out.astype(jnp.float32), ref_dec.astype(jnp.float32),
                        atol=2e-2, rtol=2e-2)
    assert jnp.allclose(enc_out.astype(jnp.float32), ref_enc.astype(jnp.float32),
                        atol=2e-2, rtol=2e-2)

    print("KERNEL_OK")
</pallas_src>

<mosaic_0001>
module attributes {stable_mosaic.version = 11 : i64} {
  func.func @_autoencoder_kernel(%arg0: i32, %arg1: memref<16x784xbf16, #tpu.memory_space<vmem>>, %arg2: memref<784x128xbf16, #tpu.memory_space<vmem>>, %arg3: memref<1x128xf32, #tpu.memory_space<vmem>>, %arg4: memref<128x64xbf16, #tpu.memory_space<vmem>>, %arg5: memref<1x64xf32, #tpu.memory_space<vmem>>, %arg6: memref<64x12xbf16, #tpu.memory_space<vmem>>, %arg7: memref<1x12xf32, #tpu.memory_space<vmem>>, %arg8: memref<12x128xbf16, #tpu.memory_space<vmem>>, %arg9: memref<1x128xf32, #tpu.memory_space<vmem>>, %arg10: memref<128x12xbf16, #tpu.memory_space<vmem>>, %arg11: memref<1x12xf32, #tpu.memory_space<vmem>>, %arg12: memref<12x64xbf16, #tpu.memory_space<vmem>>, %arg13: memref<1x64xf32, #tpu.memory_space<vmem>>, %arg14: memref<64x128xbf16, #tpu.memory_space<vmem>>, %arg15: memref<1x128xf32, #tpu.memory_space<vmem>>, %arg16: memref<128x784xbf16, #tpu.memory_space<vmem>>, %arg17: memref<1x784xf32, #tpu.memory_space<vmem>>, %arg18: memref<16x784xbf16, #tpu.memory_space<vmem>>, %arg19: memref<16x128xbf16, #tpu.memory_space<vmem>>) attributes {dimension_semantics = [#tpu.dimension_semantics<parallel>], iteration_bounds = array<i64: 1>, scalar_prefetch = 0 : i64, scratch_operands = 0 : i64, tpu.core_type = #tpu.core_type<tc>, window_params = [{transform_indices = @transform_0, window_bounds = array<i64: 16, 784>}, {pipeline_mode = #tpu.pipeline_mode<synchronous>, transform_indices = @transform_1, window_bounds = array<i64: 784, 128>}, {pipeline_mode = #tpu.pipeline_mode<synchronous>, transform_indices = @transform_2, window_bounds = array<i64: 1, 128>}, {pipeline_mode = #tpu.pipeline_mode<synchronous>, transform_indices = @transform_3, window_bounds = array<i64: 128, 64>}, {pipeline_mode = #tpu.pipeline_mode<synchronous>, transform_indices = @transform_4, window_bounds = array<i64: 1, 64>}, {pipeline_mode = #tpu.pipeline_mode<synchronous>, transform_indices = @transform_5, window_bounds = array<i64: 64, 12>}, {pipeline_mode = #tpu.pipeline_mode<synchronous>, transform_indices = @transform_6, window_bounds = array<i64: 1, 12>}, {pipeline_mode = #tpu.pipeline_mode<synchronous>, transform_indices = @transform_7, window_bounds = array<i64: 12, 128>}, {pipeline_mode = #tpu.pipeline_mode<synchronous>, transform_indices = @transform_8, window_bounds = array<i64: 1, 128>}, {pipeline_mode = #tpu.pipeline_mode<synchronous>, transform_indices = @transform_9, window_bounds = array<i64: 128, 12>}, {pipeline_mode = #tpu.pipeline_mode<synchronous>, transform_indices = @transform_10, window_bounds = array<i64: 1, 12>}, {pipeline_mode = #tpu.pipeline_mode<synchronous>, transform_indices = @transform_11, window_bounds = array<i64: 12, 64>}, {pipeline_mode = #tpu.pipeline_mode<synchronous>, transform_indices = @transform_12, window_bounds = array<i64: 1, 64>}, {pipeline_mode = #tpu.pipeline_mode<synchronous>, transform_indices = @transform_13, window_bounds = array<i64: 64, 128>}, {pipeline_mode = #tpu.pipeline_mode<synchronous>, transform_indices = @transform_14, window_bounds = array<i64: 1, 128>}, {pipeline_mode = #tpu.pipeline_mode<synchronous>, transform_indices = @transform_15, window_bounds = array<i64: 128, 784>}, {pipeline_mode = #tpu.pipeline_mode<synchronous>, transform_indices = @transform_16, window_bounds = array<i64: 1, 784>}, {transform_indices = @transform_17, window_bounds = array<i64: 16, 784>}, {transform_indices = @transform_18, window_bounds = array<i64: 16, 128>}]} {
    %c0 = arith.constant 0 : index
    %c0_0 = arith.constant 0 : index
    %0 = vector.load %arg1[%c0, %c0_0] : memref<16x784xbf16, #tpu.memory_space<vmem>>, vector<16x784xbf16>
    %c0_1 = arith.constant 0 : index
    %c0_2 = arith.constant 0 : index
    %1 = vector.load %arg2[%c0_1, %c0_2] : memref<784x128xbf16, #tpu.memory_space<vmem>>, vector<784x128xbf16>
    %cst = arith.constant dense<0.000000e+00> : vector<16x128xf32>
    %2 = tpu.matmul %0, %1, %cst {dimension_numbers = #tpu.dot_dimension_numbers<[1], [0], [0], [1], [0, 0, 1, 1], [], []>} : vector<16x784xbf16>, vector<784x128xbf16>, vector<16x128xf32> -> vector<16x128xf32>
    %c0_3 = arith.constant 0 : index
    %c0_4 = arith.constant 0 : index
    %3 = vector.load %arg3[%c0_3, %c0_4] : memref<1x128xf32, #tpu.memory_space<vmem>>, vector<1x128xf32>
    %4 = vector.broadcast %3 : vector<1x128xf32> to vector<16x128xf32>
    %5 = arith.addf %2, %4 : vector<16x128xf32>
    %cst_5 = arith.constant 0.000000e+00 : f32
    %6 = vector.broadcast %cst_5 : f32 to vector<16x128xf32>
    %7 = arith.maximumf %5, %6 : vector<16x128xf32>
    %8 = arith.truncf %7 : vector<16x128xf32> to vector<16x128xbf16>
    %c0_6 = arith.constant 0 : index
    %c0_7 = arith.constant 0 : index
    %9 = vector.load %arg4[%c0_6, %c0_7] : memref<128x64xbf16, #tpu.memory_space<vmem>>, vector<128x64xbf16>
    %cst_8 = arith.constant dense<0.000000e+00> : vector<16x64xf32>
    %10 = tpu.matmul %8, %9, %cst_8 {dimension_numbers = #tpu.dot_dimension_numbers<[1], [0], [0], [1], [0, 0, 1, 1], [], []>} : vector<16x128xbf16>, vector<128x64xbf16>, vector<16x64xf32> -> vector<16x64xf32>
    %c0_9 = arith.constant 0 : index
    %c0_10 = arith.constant 0 : index
    %11 = vector.load %arg5[%c0_9, %c0_10] : memref<1x64xf32, #tpu.memory_space<vmem>>, vector<1x64xf32>
    %12 = vector.broadcast %11 : vector<1x64xf32> to vector<16x64xf32>
    %13 = arith.addf %10, %12 : vector<16x64xf32>
    %cst_11 = arith.constant 0.000000e+00 : f32
    %14 = vector.broadcast %cst_11 : f32 to vector<16x64xf32>
    %15 = arith.maximumf %13, %14 : vector<16x64xf32>
    %16 = arith.truncf %15 : vector<16x64xf32> to vector<16x64xbf16>
    %c0_12 = arith.constant 0 : index
    %c0_13 = arith.constant 0 : index
    %17 = vector.load %arg6[%c0_12, %c0_13] : memref<64x12xbf16, #tpu.memory_space<vmem>>, vector<64x12xbf16>
    %cst_14 = arith.constant dense<0.000000e+00> : vector<16x12xf32>
    %18 = tpu.matmul %16, %17, %cst_14 {dimension_numbers = #tpu.dot_dimension_numbers<[1], [0], [0], [1], [0, 0, 1, 1], [], []>} : vector<16x64xbf16>, vector<64x12xbf16>, vector<16x12xf32> -> vector<16x12xf32>
    %c0_15 = arith.constant 0 : index
    %c0_16 = arith.constant 0 : index
    %19 = vector.load %arg7[%c0_15, %c0_16] : memref<1x12xf32, #tpu.memory_space<vmem>>, vector<1x12xf32>
    %20 = vector.broadcast %19 : vector<1x12xf32> to vector<16x12xf32>
    %21 = arith.addf %18, %20 : vector<16x12xf32>
    %cst_17 = arith.constant 0.000000e+00 : f32
    %22 = vector.broadcast %cst_17 : f32 to vector<16x12xf32>
    %23 = arith.maximumf %21, %22 : vector<16x12xf32>
    %24 = arith.truncf %23 : vector<16x12xf32> to vector<16x12xbf16>
    %c0_18 = arith.constant 0 : index
    %c0_19 = arith.constant 0 : index
    %25 = vector.load %arg8[%c0_18, %c0_19] : memref<12x128xbf16, #tpu.memory_space<vmem>>, vector<12x128xbf16>
    %cst_20 = arith.constant dense<0.000000e+00> : vector<16x128xf32>
    %26 = tpu.matmul %24, %25, %cst_20 {dimension_numbers = #tpu.dot_dimension_numbers<[1], [0], [0], [1], [0, 0, 1, 1], [], []>} : vector<16x12xbf16>, vector<12x128xbf16>, vector<16x128xf32> -> vector<16x128xf32>
    %c0_21 = arith.constant 0 : index
    %c0_22 = arith.constant 0 : index
    %27 = vector.load %arg9[%c0_21, %c0_22] : memref<1x128xf32, #tpu.memory_space<vmem>>, vector<1x128xf32>
    %28 = vector.broadcast %27 : vector<1x128xf32> to vector<16x128xf32>
    %29 = arith.addf %26, %28 : vector<16x128xf32>
    %cst_23 = arith.constant 0.000000e+00 : f32
    %30 = vector.broadcast %cst_23 : f32 to vector<16x128xf32>
    %31 = arith.maximumf %29, %30 : vector<16x128xf32>
    %32 = arith.truncf %31 : vector<16x128xf32> to vector<16x128xbf16>
    %c0_24 = arith.constant 0 : index
    %c0_25 = arith.constant 0 : index
    %33 = vector.load %arg10[%c0_24, %c0_25] : memref<128x12xbf16, #tpu.memory_space<vmem>>, vector<128x12xbf16>
    %cst_26 = arith.constant dense<0.000000e+00> : vector<16x12xf32>
    %34 = tpu.matmul %32, %33, %cst_26 {dimension_numbers = #tpu.dot_dimension_numbers<[1], [0], [0], [1], [0, 0, 1, 1], [], []>} : vector<16x128xbf16>, vector<128x12xbf16>, vector<16x12xf32> -> vector<16x12xf32>
    %c0_27 = arith.constant 0 : index
    %c0_28 = arith.constant 0 : index
    %35 = vector.load %arg11[%c0_27, %c0_28] : memref<1x12xf32, #tpu.memory_space<vmem>>, vector<1x12xf32>
    %36 = vector.broadcast %35 : vector<1x12xf32> to vector<16x12xf32>
    %37 = arith.addf %34, %36 : vector<16x12xf32>
    %cst_29 = arith.constant 0.000000e+00 : f32
    %38 = vector.broadcast %cst_29 : f32 to vector<16x12xf32>
    %39 = arith.maximumf %37, %38 : vector<16x12xf32>
    %40 = arith.truncf %39 : vector<16x12xf32> to vector<16x12xbf16>
    %c0_30 = arith.constant 0 : index
    %c0_31 = arith.constant 0 : index
    %41 = vector.load %arg12[%c0_30, %c0_31] : memref<12x64xbf16, #tpu.memory_space<vmem>>, vector<12x64xbf16>
    %cst_32 = arith.constant dense<0.000000e+00> : vector<16x64xf32>
    %42 = tpu.matmul %40, %41, %cst_32 {dimension_numbers = #tpu.dot_dimension_numbers<[1], [0], [0], [1], [0, 0, 1, 1], [], []>} : vector<16x12xbf16>, vector<12x64xbf16>, vector<16x64xf32> -> vector<16x64xf32>
    %c0_33 = arith.constant 0 : index
    %c0_34 = arith.constant 0 : index
    %43 = vector.load %arg13[%c0_33, %c0_34] : memref<1x64xf32, #tpu.memory_space<vmem>>, vector<1x64xf32>
    %44 = vector.broadcast %43 : vector<1x64xf32> to vector<16x64xf32>
    %45 = arith.addf %42, %44 : vector<16x64xf32>
    %cst_35 = arith.constant 0.000000e+00 : f32
    %46 = vector.broadcast %cst_35 : f32 to vector<16x64xf32>
    %47 = arith.maximumf %45, %46 : vector<16x64xf32>
    %48 = arith.truncf %47 : vector<16x64xf32> to vector<16x64xbf16>
    %c0_36 = arith.constant 0 : index
    %c0_37 = arith.constant 0 : index
    %49 = vector.load %arg14[%c0_36, %c0_37] : memref<64x128xbf16, #tpu.memory_space<vmem>>, vector<64x128xbf16>
    %cst_38 = arith.constant dense<0.000000e+00> : vector<16x128xf32>
    %50 = tpu.matmul %48, %49, %cst_38 {dimension_numbers = #tpu.dot_dimension_numbers<[1], [0], [0], [1], [0, 0, 1, 1], [], []>} : vector<16x64xbf16>, vector<64x128xbf16>, vector<16x128xf32> -> vector<16x128xf32>
    %c0_39 = arith.constant 0 : index
    %c0_40 = arith.constant 0 : index
    %51 = vector.load %arg15[%c0_39, %c0_40] : memref<1x128xf32, #tpu.memory_space<vmem>>, vector<1x128xf32>
    %52 = vector.broadcast %51 : vector<1x128xf32> to vector<16x128xf32>
    %53 = arith.addf %50, %52 : vector<16x128xf32>
    %cst_41 = arith.constant 0.000000e+00 : f32
    %54 = vector.broadcast %cst_41 : f32 to vector<16x128xf32>
    %55 = arith.maximumf %53, %54 : vector<16x128xf32>
    %56 = arith.truncf %55 : vector<16x128xf32> to vector<16x128xbf16>
    %c0_42 = arith.constant 0 : index
    %c0_43 = arith.constant 0 : index
    %57 = vector.load %arg16[%c0_42, %c0_43] : memref<128x784xbf16, #tpu.memory_space<vmem>>, vector<128x784xbf16>
    %cst_44 = arith.constant dense<0.000000e+00> : vector<16x784xf32>
    %58 = tpu.matmul %56, %57, %cst_44 {dimension_numbers = #tpu.dot_dimension_numbers<[1], [0], [0], [1], [0, 0, 1, 1], [], []>} : vector<16x128xbf16>, vector<128x784xbf16>, vector<16x784xf32> -> vector<16x784xf32>
    %c0_45 = arith.constant 0 : index
    %c0_46 = arith.constant 0 : index
    %59 = vector.load %arg17[%c0_45, %c0_46] : memref<1x784xf32, #tpu.memory_space<vmem>>, vector<1x784xf32>
    %60 = vector.broadcast %59 : vector<1x784xf32> to vector<16x784xf32>
    %61 = arith.addf %58, %60 : vector<16x784xf32>
    %62 = math.tanh %61 : vector<16x784xf32>
    %63 = arith.truncf %62 : vector<16x784xf32> to vector<16x784xbf16>
    %c0_47 = arith.constant 0 : index
    %c0_48 = arith.constant 0 : index
    %64 = vector.load %arg18[%c0_47, %c0_48] : memref<16x784xbf16, #tpu.memory_space<vmem>>, vector<16x784xbf16>
    tpu.vector_store %arg18[%c0_47, %c0_48], %63 {strides = array<i32>} : memref<16x784xbf16, #tpu.memory_space<vmem>>, vector<16x784xbf16>,
    %65 = arith.truncf %31 : vector<16x128xf32> to vector<16x128xbf16>
    %c0_49 = arith.constant 0 : index
    %c0_50 = arith.constant 0 : index
    %66 = vector.load %arg19[%c0_49, %c0_50] : memref<16x128xbf16, #tpu.memory_space<vmem>>, vector<16x128xbf16>
    tpu.vector_store %arg19[%c0_49, %c0_50], %65 {strides = array<i32>} : memref<16x128xbf16, #tpu.memory_space<vmem>>, vector<16x128xbf16>,
    return
  }
  func.func @transform_0(%arg0: i32) -> (i32, i32) {
    %c0_i32 = arith.constant 0 : i32
    %c0_i32_0 = arith.constant 0 : i32
    return %arg0, %c0_i32 : i32, i32
  }
  func.func @transform_1(%arg0: i32) -> (i32, i32) {
    %c0_i32 = arith.constant 0 : i32
    %c0_i32_0 = arith.constant 0 : i32
    %c0_i32_1 = arith.constant 0 : i32
    return %c0_i32, %c0_i32_0 : i32, i32
  }
  func.func @transform_2(%arg0: i32) -> (i32, i32) {
    %c0_i32 = arith.constant 0 : i32
    %c0_i32_0 = arith.constant 0 : i32
    %c0_i32_1 = arith.constant 0 : i32
    return %c0_i32, %c0_i32_0 : i32, i32
  }
  func.func @transform_3(%arg0: i32) -> (i32, i32) {
    %c0_i32 = arith.constant 0 : i32
    %c0_i32_0 = arith.constant 0 : i32
    %c0_i32_1 = arith.constant 0 : i32
    return %c0_i32, %c0_i32_0 : i32, i32
  }
  func.func @transform_4(%arg0: i32) -> (i32, i32) {
    %c0_i32 = arith.constant 0 : i32
    %c0_i32_0 = arith.constant 0 : i32
    %c0_i32_1 = arith.constant 0 : i32
    return %c0_i32, %c0_i32_0 : i32, i32
  }
  func.func @transform_5(%arg0: i32) -> (i32, i32) {
    %c0_i32 = arith.constant 0 : i32
    %c0_i32_0 = arith.constant 0 : i32
    %c0_i32_1 = arith.constant 0 : i32
    return %c0_i32, %c0_i32_0 : i32, i32
  }
  func.func @transform_6(%arg0: i32) -> (i32, i32) {
    %c0_i32 = arith.constant 0 : i32
    %c0_i32_0 = arith.constant 0 : i32
    %c0_i32_1 = arith.constant 0 : i32
    return %c0_i32, %c0_i32_0 : i32, i32
  }
  func.func @transform_7(%arg0: i32) -> (i32, i32) {
    %c0_i32 = arith.constant 0 : i32
    %c0_i32_0 = arith.constant 0 : i32
    %c0_i32_1 = arith.constant 0 : i32
    return %c0_i32, %c0_i32_0 : i32, i32
  }
  func.func @transform_8(%arg0: i32) -> (i32, i32) {
    %c0_i32 = arith.constant 0 : i32
    %c0_i32_0 = arith.constant 0 : i32
    %c0_i32_1 = arith.constant 0 : i32
    return %c0_i32, %c0_i32_0 : i32, i32
  }
  func.func @transform_9(%arg0: i32) -> (i32, i32) {
    %c0_i32 = arith.constant 0 : i32
    %c0_i32_0 = arith.constant 0 : i32
    %c0_i32_1 = arith.constant 0 : i32
    return %c0_i32, %c0_i32_0 : i32, i32
  }
  func.func @transform_10(%arg0: i32) -> (i32, i32) {
    %c0_i32 = arith.constant 0 : i32
    %c0_i32_0 = arith.constant 0 : i32
    %c0_i32_1 = arith.constant 0 : i32
    return %c0_i32, %c0_i32_0 : i32, i32
  }
  func.func @transform_11(%arg0: i32) -> (i32, i32) {
    %c0_i32 = arith.constant 0 : i32
    %c0_i32_0 = arith.constant 0 : i32
    %c0_i32_1 = arith.constant 0 : i32
    return %c0_i32, %c0_i32_0 : i32, i32
  }
  func.func @transform_12(%arg0: i32) -> (i32, i32) {
    %c0_i32 = arith.constant 0 : i32
    %c0_i32_0 = arith.constant 0 : i32
    %c0_i32_1 = arith.constant 0 : i32
    return %c0_i32, %c0_i32_0 : i32, i32
  }
  func.func @transform_13(%arg0: i32) -> (i32, i32) {
    %c0_i32 = arith.constant 0 : i32
    %c0_i32_0 = arith.constant 0 : i32
    %c0_i32_1 = arith.constant 0 : i32
    return %c0_i32, %c0_i32_0 : i32, i32
  }
  func.func @transform_14(%arg0: i32) -> (i32, i32) {
    %c0_i32 = arith.constant 0 : i32
    %c0_i32_0 = arith.constant 0 : i32
    %c0_i32_1 = arith.constant 0 : i32
    return %c0_i32, %c0_i32_0 : i32, i32
  }
  func.func @transform_15(%arg0: i32) -> (i32, i32) {
    %c0_i32 = arith.constant 0 : i32
    %c0_i32_0 = arith.constant 0 : i32
    %c0_i32_1 = arith.constant 0 : i32
    return %c0_i32, %c0_i32_0 : i32, i32
  }
  func.func @transform_16(%arg0: i32) -> (i32, i32) {
    %c0_i32 = arith.constant 0 : i32
    %c0_i32_0 = arith.constant 0 : i32
    %c0_i32_1 = arith.constant 0 : i32
    return %c0_i32, %c0_i32_0 : i32, i32
  }
  func.func @transform_17(%arg0: i32) -> (i32, i32) {
    %c0_i32 = arith.constant 0 : i32
    %c0_i32_0 = arith.constant 0 : i32
    return %arg0, %c0_i32 : i32, i32
  }
  func.func @transform_18(%arg0: i32) -> (i32, i32) {
    %c0_i32 = arith.constant 0 : i32
    %c0_i32_0 = arith.constant 0 : i32
    return %arg0, %c0_i32 : i32, i32
  }
}

</mosaic_0001>

<bundles_post_ra>
// kernel: autoencoder_forward.1
= control target key start
LH: loop header
LB: loop body
LE: loop exit
PB: predicated region body
PF: predicated region fallthrough
CT: control target
= control target key end

     0   :  { %v2430_v38 = vmov 0.0   ;;  %vm2431_vm0 = vmmov 0   ;;  %vm501_vm1 = vcmask 130048   ;;  %vm826_vm2 = vcmask 523264   ;;  %s3050_s1 = inlined_call_operand.vmem [shape: bf16[784,128], index: 1, kind: input, shape index: {}]   ;;  %s3051_s0 = inlined_call_operand.vmem [shape: bf16[16,784], index: 0, kind: input, shape index: {}]   ;;  %s3052_s3 = inlined_call_operand.vmem [shape: bf16[128,64], index: 3, kind: input, shape index: {}]   ;;  %s3053_s5 = inlined_call_operand.vmem [shape: bf16[64,12], index: 5, kind: input, shape index: {}]   ;;  %s3054_s2 = inlined_call_operand.vmem [shape: f32[1,128], index: 2, kind: input, shape index: {}]   ;;  %s3055_s4 = inlined_call_operand.vmem [shape: f32[1,64], index: 4, kind: input, shape index: {}]   ;;  %s3056_s7 = inlined_call_operand.vmem [shape: bf16[12,128], index: 7, kind: input, shape index: {}]   ;;  %s3057_s9 = inlined_call_operand.vmem [shape: bf16[128,12], index: 9, kind: input, shape index: {}]   ;;  %s3058_s6 = inlined_call_operand.vmem [shape: f32[1,12], index: 6, kind: input, shape index: {}]   ;;  %s3059_s8 = inlined_call_operand.vmem [shape: f32[1,128], index: 8, kind: input, shape index: {}]   ;;  %s3060_s18 = inlined_call_operand.vmem [shape: bf16[16,128], index: 18, kind: output, shape index: {1}]   ;;  %s3061_s11 = inlined_call_operand.vmem [shape: bf16[12,64], index: 11, kind: input, shape index: {}]   ;;  %s3062_s13 = inlined_call_operand.vmem [shape: bf16[64,128], index: 13, kind: input, shape index: {}]   ;;  %s3063_s10 = inlined_call_operand.vmem [shape: f32[1,12], index: 10, kind: input, shape index: {}]   ;;  %s3064_s15 = inlined_call_operand.vmem [shape: bf16[128,784], index: 15, kind: input, shape index: {}]   ;;  %s3065_s12 = inlined_call_operand.vmem [shape: f32[1,64], index: 12, kind: input, shape index: {}]   ;;  %s3066_s14 = inlined_call_operand.vmem [shape: f32[1,128], index: 14, kind: input, shape index: {}]   ;;  %s3067_s16 = inlined_call_operand.vmem [shape: f32[1,784], index: 16, kind: input, shape index: {}]   ;;  %s3068_s17 = inlined_call_operand.vmem [shape: bf16[16,784], index: 17, kind: output, shape index: {0}]  }
   0x1   :  { %3072 = sst [smem:[#allocation2_spill]] %s3050_s1  ;;  %vm892_vm3 = vcmask 1045504   ;;  %vm888_vm4 = vcmask 97280   ;;  %vm1825_vm5 = vcmask 125952  }
   0x2   :  { %3073 = sst [smem:[#allocation3_spill]] %s3051_s0  ;;  %s3075_s29 = sld [smem:[#allocation2_spill]] }
   0x3   :  { %3074 = sst [smem:[#allocation4_spill]] %s3052_s3  ;;  %s3076_s22 = sld [smem:[#allocation3_spill]] }
   0x4   :  { %s3077_s20 = sld [smem:[#allocation4_spill]] }
   0x8   :  { %v2237_v0 = vld [vmem:[%s3075_s29 + $0x40] sm:$0xff]   ;;  %v2241_v4 = vld [vmem:[%s3075_s29 + $0x48] sm:$0xff]   ;;  %v2245_v8 = vld [vmem:[%s3075_s29 + $0x50] sm:$0xff]  }
   0x9   :  { %v2238_v1 = vld [vmem:[%s3075_s29] sm:$0xff]   ;;  %2023 = vmatprep.subr.bf16.mxu0 %v2237_v0  ;;  %v2242_v5 = vld [vmem:[%s3075_s29 + $0x8] sm:$0xff]   ;;  %v2246_v9 = vld [vmem:[%s3075_s29 + $0x10] sm:$0xff]  }
   0xa   :  { %v2239_v2 = vld [vmem:[%s3075_s29 + $0xc0] sm:$0xff]   ;;  %2024 = vmatpush3.bf16.msra.mxu0 %v2238_v1  ;;  %v2243_v6 = vld [vmem:[%s3075_s29 + $0xc8] sm:$0xff]   ;;  %v2247_v10 = vld [vmem:[%s3075_s29 + $0xd0] sm:$0xff]  }
   0xb   :  { %v2240_v3 = vld [vmem:[%s3075_s29 + $0x80] sm:$0xff]   ;;  %2045 = vmatprep.subr.bf16.mxu1 %v2239_v2  ;;  %2025 = vmatprep.subr.bf16.mxu0 %v2241_v4  ;;  %v2244_v7 = vld [vmem:[%s3075_s29 + $0x88] sm:$0xff]   ;;  %v2248_v11 = vld [vmem:[%s3075_s29 + $0x90] sm:$0xff]  }
   0xc   :  { %2046 = vmatpush3.bf16.msra.mxu1 %v2240_v3  ;;  %v2249_v12 = vld [vmem:[%s3075_s29 + $0x58] sm:$0xff]   ;;  %v2253_v16 = vld [vmem:[%s3075_s29 + $0x60] sm:$0xff]   ;;  %v2257_v20 = vld [vmem:[%s3075_s29 + $0x68] sm:$0xff]  }
   0xd   :  { %2047 = vmatprep.subr.bf16.mxu1 %v2243_v6  ;;  %v2250_v13 = vld [vmem:[%s3075_s29 + $0x18] sm:$0xff]   ;;  %v2254_v17 = vld [vmem:[%s3075_s29 + $0x20] sm:$0xff]   ;;  %v2258_v21 = vld [vmem:[%s3075_s29 + $0x28] sm:$0xff]  }
   0xe   :  { %2026 = vmatpush3.bf16.msra.mxu0 %v2242_v5  ;;  %v2251_v14 = vld [vmem:[%s3075_s29 + $0xd8] sm:$0xff]   ;;  %v2255_v18 = vld [vmem:[%s3075_s29 + $0xe0] sm:$0xff]   ;;  %v2259_v22 = vld [vmem:[%s3075_s29 + $0xe8] sm:$0xff]  }
   0xf   :  { %2027 = vmatprep.subr.bf16.mxu0 %v2245_v8  ;;  %v2252_v15 = vld [vmem:[%s3075_s29 + $0x98] sm:$0xff]   ;;  %v2256_v19 = vld [vmem:[%s3075_s29 + $0xa0] sm:$0xff]   ;;  %v2260_v23 = vld [vmem:[%s3075_s29 + $0xa8] sm:$0xff]  }
  0x10   :  { %2048 = vmatpush3.bf16.msra.mxu1 %v2244_v7  ;;  %v2261_v24 = vld [vmem:[%s3075_s29 + $0x70] sm:$0xff]   ;;  %v2265_v28 = vld [vmem:[%s3075_s29 + $0x78] sm:$0xff]   ;;  %v2270_v32 = vld [vmem:[%s3076_s22 + $0x4] ss:$28 sps:$4 sm:$0xff]  }
  0x11   :  { %2049 = vmatprep.subr.bf16.mxu1 %v2247_v10  ;;  %v2262_v25 = vld [vmem:[%s3075_s29 + $0x30] sm:$0xff]   ;;  %v2266_v29 = vld [vmem:[%s3075_s29 + $0x38] sm:$0xff]   ;;  %537 = vmatprep.mubr.bf16.mxu0 %v2270_v32  ;;  %v2272_v34 = vld [vmem:[%s3075_s29 + $0x140] sm:$0xff]  }
  0x12   :  { %2028 = vmatpush3.bf16.msra.mxu0 %v2246_v9  ;;  %v2263_v26 = vld [vmem:[%s3075_s29 + $0xf0] sm:$0xff]   ;;  %v2267_v30 = vld [vmem:[%s3075_s29 + $0xf8] sm:$0xff]   ;;  %v2273_v35 = vld [vmem:[%s3076_s22 + $0x8] ss:$28 sps:$4 sm:$0xff]  }
  0x13   :  { %2029 = vmatprep.subr.bf16.mxu0 %v2249_v12  ;;  %v2264_v27 = vld [vmem:[%s3075_s29 + $0xb0] sm:$0xff]   ;;  %v2268_v31 = vld [vmem:[%s3076_s22] ss:$28 sps:$4 sm:$0xff]   ;;  %v2275_v36 = vld [vmem:[%s3076_s22 + $0xc] ss:$28 sps:$4 sm:$0xff]  }
  0x14   :  { %2050 = vmatpush3.bf16.msra.mxu1 %v2248_v11  ;;  %v2271_v33 = vld [vmem:[%s3075_s29 + $0xb8] sm:$0xff]   ;;  %v2276_v37 = vld [vmem:[%s3075_s29 + $0x100] sm:$0xff]   ;;  %578 = vmatprep.mubr.bf16.mxu1 %v2275_v36  ;;  %v2277_v39 = vld [vmem:[%s3075_s29 + $0x148] sm:$0xff]  }
  0x15   :  { %2051 = vmatprep.subr.bf16.mxu1 %v2251_v14  ;;  %v2278_v40 = vld [vmem:[%s3075_s29 + $0x108] sm:$0xff]   ;;  %v2279_v41 = vld [vmem:[%s3075_s29 + $0x150] sm:$0xff]   ;;  %v2281_v43 = vld [vmem:[%s3075_s29 + $0x158] sm:$0xff]  }
  0x16   :  { %2030 = vmatpush3.bf16.msra.mxu0 %v2250_v13  ;;  %v2280_v42 = vld [vmem:[%s3075_s29 + $0x110] sm:$0xff]   ;;  %v2282_v44 = vld [vmem:[%s3075_s29 + $0x118] sm:$0xff]   ;;  %v2283_v45 = vld [vmem:[%s3075_s29 + $0x160] sm:$0xff]  }
  0x17   :  { %2031 = vmatprep.subr.bf16.mxu0 %v2253_v16  ;;  %v2284_v46 = vld [vmem:[%s3075_s29 + $0x120] sm:$0xff]   ;;  %v2285_v47 = vld [vmem:[%s3075_s29 + $0x168] sm:$0xff]   ;;  %v2294_v49 = vld [vmem:[%s3076_s22 + $0x14] ss:$28 sps:$4 sm:$0xff]  }
  0x18   :  { %2052 = vmatpush3.bf16.msra.mxu1 %v2252_v15  ;;  %v2291_v48 = vld [vmem:[%s3075_s29 + $0x180] sm:$0xff]   ;;  %v2295_v50 = vld [vmem:[%s3076_s22 + $0x18] ss:$28 sps:$4 sm:$0xff]   ;;  %v2286_v51 = vld [vmem:[%s3075_s29 + $0x128] sm:$0xff]  }
  0x19   :  { %2053 = vmatprep.subr.bf16.mxu1 %v2255_v18  ;;  %v2287_v52 = vld [vmem:[%s3075_s29 + $0x170] sm:$0xff]   ;;  %v2289_v54 = vld [vmem:[%s3075_s29 + $0x178] sm:$0xff]   ;;  %v2296_v57 = vld [vmem:[%s3077_s20] sm:$0xff]  }
  0x1a   :  { %2032 = vmatpush3.bf16.msra.mxu0 %v2254_v17  ;;  %v2288_v53 = vld [vmem:[%s3075_s29 + $0x130] sm:$0xff]   ;;  %v2290_v55 = vld [vmem:[%s3075_s29 + $0x138] sm:$0xff]   ;;  %v2297_v58 = vld [vmem:[%s3077_s20 + $0x8] sm:$0xff]  }
  0x1b   :  { %2033 = vmatprep.subr.bf16.mxu0 %v2257_v20  ;;  %v2292_v56 = vld [vmem:[%s3076_s22 + $0x10] ss:$28 sps:$4 sm:$0xff]   ;;  %v2299_v60 = vld [vmem:[%s3077_s20 + $0x18] sm:$0xff]   ;;  %v2300_v61 = vld [vmem:[%s3077_s20 + $0x20] sm:$0xff]  }
  0x1c   :  { %2054 = vmatpush3.bf16.msra.mxu1 %v2256_v19  ;;  %v2298_v59 = vld [vmem:[%s3077_s20 + $0x10] sm:$0xff]   ;;  %v2301_v62 = vld [vmem:[%s3077_s20 + $0x28] sm:$0xff]   ;;  %v2303_v0 = vld [vmem:[%s3077_s20 + $0x38] sm:$0xff]  }
  0x1d   :  { %2055 = vmatprep.subr.bf16.mxu1 %v2259_v22  ;;  %v2302_v63 = vld [vmem:[%s3077_s20 + $0x30] sm:$0xff]   ;;  %v2304_v1 = vld [vmem:[%s3053_s5] sm:$0xff]   ;;  %v2305_v2 = vld [vmem:[%s3053_s5 + $0x8] sm:$0xff]  }
  0x1e   :  { %2034 = vmatpush3.bf16.msra.mxu0 %v2258_v21  ;;  %v1848_v4 = vld [vmem:[%s3054_s2] ss:$0 sm:$0xff] }
  0x1f   :  { %2035 = vmatprep.subr.bf16.mxu0 %v2261_v24 }
  0x20   :  { %2056 = vmatpush3.bf16.msra.mxu1 %v2260_v23 }
  0x21   :  { %2057 = vmatprep.subr.bf16.mxu1 %v2263_v26 }
  0x22   :  { %2036 = vmatpush3.bf16.msra.mxu0 %v2262_v25 }
  0x23   :  { %2037 = vmatprep.subr.bf16.mxu0 %v2265_v28 }
  0x24   :  { %2058 = vmatpush3.bf16.msra.mxu1 %v2264_v27 }
  0x25   :  { %2059 = vmatprep.subr.bf16.mxu1 %v2267_v30 }
  0x26   :  { %2038 = vmatpush3.bf16.msra.mxu0 %v2266_v29 }
  0x27   :  { %2067 = vmatprep.subr.bf16.mxu0 %v2272_v34 }
  0x28   :  { %2060 = vmatpush3.bf16.msra.mxu1 %v2271_v33 }
  0x29   :  { %538 = vmatmul.mubr.bf16.vlgmr.msra.gmra.mrb[0].mxu0 %v2268_v31  ;;  %2132 = vmatprep.subr.bf16.mxu1 %v2430_v38 }
  0x2a   :  { %2068 = vmatpush3.bf16.msra.mxu0 %v2276_v37  ;;  %619 = vmatprep.mubr.bf16.mxu0 %v2294_v49  ;;  %v2306_v37 = vld [vmem:[%s3053_s5 + $0x10] sm:$0xff]  }
  0x2b   :  { %579 = vmatmul.mubr.bf16.vlgmr.msra.gmra.mrb[0].mxu1 %v2273_v35  ;;  %2069 = vmatprep.subr.bf16.mxu0 %v2277_v39  ;;  %v2307_v39 = vld [vmem:[%s3053_s5 + $0x18] sm:$0xff]  }
  0x2c   :  { %2134 = vmatprep.mubr.msk.bf16.mxu1 %vm2431_vm0, %v2430_v38  ;;  %2133 = vmatpush3.bf16.msra.mxu1 %v2291_v48 }
  0x2d   :  { %2138 = vmatprep.subr.bf16.mxu1 %v2430_v38 }
  0x2e   :  { %2070 = vmatpush3.bf16.msra.mxu0 %v2278_v40  ;;  %v1906_v40 = vld [vmem:[%s3055_s4] ss:$0 sm:$0xff] }
  0x2f   :  { %2071 = vmatprep.subr.bf16.mxu0 %v2279_v41 }
  0x32   :  { %2072 = vmatpush3.bf16.msra.mxu0 %v2280_v42 }
  0x33   :  { %2073 = vmatprep.subr.bf16.mxu0 %v2281_v43  ;;  %2135 = vmatmul.mubr.msk.bf16.vlgmr.msra.gmra.mrb[4].mxu1 %vm501_vm1, %v2295_v50  ;;  %v2308_v50 = vld [vmem:[%s3056_s7] sm:$0x3f]  }
  0x34   :  { %2154 = vmatprep.mubr.msk.bf16.mxu1 %vm2431_vm0, %v2430_v38  ;;  %2139 = vmatpush3.bf16.msra.mxu1 %v2296_v57  ;;  %v2314_v57 = vld [vmem:[%s3057_s9 + $0x28] sm:$0xff]  }
  0x35   :  { %2140 = vmatprep.subr.bf16.mxu1 %v2430_v38 }
  0x36   :  { %2074 = vmatpush3.bf16.msra.mxu0 %v2282_v44 }
  0x37   :  { %2075 = vmatprep.subr.bf16.mxu0 %v2283_v45 }
  0x38   :  { %2141 = vmatpush3.bf16.msra.mxu1 %v2297_v58  ;;  %v1915_v58 = vld [vmem:[%s3058_s6] ss:$0 sm:$0xff] }
  0x39   :  { %2142 = vmatprep.subr.bf16.mxu1 %v2430_v38 }
  0x3a   :  { %2076 = vmatpush3.bf16.msra.mxu0 %v2284_v46 }
  0x3b   :  { %2077 = vmatprep.subr.bf16.mxu0 %v2285_v47 }
  0x3c   :  { %2143 = vmatpush3.bf16.msra.mxu1 %v2298_v59 }
  0x3d   :  { %2144 = vmatprep.subr.bf16.mxu1 %v2430_v38 }
  0x3e   :  { %2078 = vmatpush3.bf16.msra.mxu0 %v2286_v51  ;;  %v894_v51 = vsel %vm892_vm3, %v2308_v50, 0 }
  0x3f   :  { %2079 = vmatprep.subr.bf16.mxu0 %v2287_v52  ;;  %v2309_v52 = vld [vmem:[%s3057_s9] sm:$0xff]  }
  0x40   :  { %2145 = vmatpush3.bf16.msra.mxu1 %v2299_v60 }
  0x41   :  { %2146 = vmatprep.subr.bf16.mxu1 %v2430_v38 }
  0x42   :  { %2080 = vmatpush3.bf16.msra.mxu0 %v2288_v53  ;;  %v2310_v53 = vld [vmem:[%s3057_s9 + $0x8] sm:$0xff]  }
  0x43   :  { %2081 = vmatprep.subr.bf16.mxu0 %v2289_v54  ;;  %v2311_v54 = vld [vmem:[%s3057_s9 + $0x10] sm:$0xff]  }
  0x44   :  { %2147 = vmatpush3.bf16.msra.mxu1 %v2300_v61 }
  0x45   :  { %2148 = vmatprep.subr.bf16.mxu1 %v2430_v38 }
  0x46   :  { %2082 = vmatpush3.bf16.msra.mxu0 %v2290_v55  ;;  %v2312_v55 = vld [vmem:[%s3057_s9 + $0x18] sm:$0xff]  }
  0x47   :  { %2158 = vmatprep.subr.bf16.mxu0 %v2430_v38 }
  0x48   :  { %2149 = vmatpush3.bf16.msra.mxu1 %v2301_v62 }
  0x49   :  { %620 = vmatmul.mubr.bf16.vlgmr.msra.gmra.mrb[4].mxu0 %v2292_v56  ;;  %2150 = vmatprep.subr.bf16.mxu1 %v2430_v38  ;;  %v2313_v56 = vld [vmem:[%s3057_s9 + $0x20] sm:$0xff]  }
  0x4a   :  { %2166 = vmatprep.mubr.msk.bf16.mxu0 %vm2431_vm0, %v2430_v38  ;;  %2159 = vmatpush3.bf16.msra.mxu0 %v2304_v1 }
  0x4b   :  { %2160 = vmatprep.subr.bf16.mxu0 %v2430_v38 }
  0x4c   :  { %2151 = vmatpush3.bf16.msra.mxu1 %v2302_v63 }
  0x4d   :  { %2152 = vmatprep.subr.bf16.mxu1 %v2430_v38 }
  0x4e   :  { %2161 = vmatpush3.bf16.msra.mxu0 %v2305_v2 }
  0x4f   :  { %2162 = vmatprep.subr.bf16.mxu0 %v2430_v38 }
  0x50   :  { %2153 = vmatpush3.bf16.msra.mxu1 %v2303_v0 }
  0x51   :  { %2170 = vmatprep.subr.bf16.mxu1 %v2430_v38 }
  0x52   :  { %2163 = vmatpush3.bf16.msra.mxu0 %v2306_v37  ;;  %v2339_v37 = vld [vmem:[%s3064_s15 + $0x7c] ss:$28 sps:$4 sm:$0xff]  }
  0x53   :  { %2164 = vmatprep.subr.bf16.mxu0 %v2430_v38 }
  0x56   :  { %2165 = vmatpush3.bf16.msra.mxu0 %v2307_v39  ;;  %v2337_v39 = vld [vmem:[%s3064_s15 + $0x78] ss:$28 sps:$4 sm:$0xff]  }
  0x57   :  { %2176 = vmatprep.subr.bf16.mxu0 %v2430_v38 }
  0xfc   :  { %v2039_v3 = vpop.f32.mrb[0].mxu0 }
  0xfd   :  { %v2040_v5 = vpop.f32.mrb[1].mxu0 }
  0xfe   :  { %v2041_v6 = vadd.f32 %v2040_v5, %v2039_v3  ;;  %v2042_v7 = vpop.f32.mrb[2].mxu0  ;;  %v2061_v8 = vpop.f32.mrb[0].mxu1  ;;  %v2316_v5 = vld [vmem:[%s3057_s9 + $0x38] sm:$0xff]  }
  0xff   :  { %v2043_v9 = vpop.f32.mrb[3].mxu0  ;;  %v2062_v12 = vpop.f32.mrb[1].mxu1 }
 0x100   :  { %v540_v10 = vadd.f32 %v2041_v6, %v1848_v4  ;;  %v2044_v11 = vadd.f32 %v2043_v9, %v2042_v7  ;;  %v2063_v13 = vadd.f32 %v2062_v12, %v2061_v8  ;;  %v2064_v14 = vpop.f32.mrb[2].mxu1  ;;  %v1921_v6 = vld [vmem:[%s3059_s8] ss:$0 sm:$0xff] }
 0x101   :  { %v2065_v16 = vpop.f32.mrb[3].mxu1 }
 0x102   :  { %v543_v15 = vadd.f32 %v2044_v11, %v1848_v4  ;;  %v581_v17 = vadd.f32 %v2063_v13, %v540_v10  ;;  %v2066_v18 = vadd.f32 %v2065_v16, %v2064_v14  ;;  %v2315_v4 = vld [vmem:[%s3057_s9 + $0x30] sm:$0xff]   ;;  %v2317_v16 = vld [vmem:[%s3061_s11] sm:$0x3f]  }
 0x104   :  { %v584_v19 = vadd.f32 %v2066_v18, %v543_v15  ;;  %v1924_v18 = vld [vmem:[%s3063_s10] ss:$0 sm:$0xff] }
 0x106   :  { %v662_v20 = vpop.f32.mrb[4].mxu1 }
 0x107   :  { %v2136_v21 = vpop.f32.mrb[5].mxu1 }
 0x108   :  { %v665_v22 = vpop.f32.mrb[6].mxu1 }
 0x109   :  { %v2137_v23 = vpop.f32.mrb[7].mxu1 }
 0x11c   :  { %v2083_v24 = vpop.f32.mrb[4].mxu0 }
 0x11d   :  { %v2084_v25 = vpop.f32.mrb[5].mxu0 }
 0x11e   :  { %v2085_v26 = vadd.f32 %v2084_v25, %v2083_v24  ;;  %v2086_v27 = vpop.f32.mrb[6].mxu0 }
 0x11f   :  { %v2087_v28 = vpop.f32.mrb[7].mxu0 }
 0x120   :  { %v622_v29 = vadd.f32 %v2085_v26, %v581_v17  ;;  %v2088_v30 = vadd.f32 %v2087_v28, %v2086_v27  ;;  %v1073_v17 = vsel %vm892_vm3, %v2317_v16, 0  ;;  %v2318_v27 = vld [vmem:[%s3062_s13] sm:$0xff]  }
 0x122   :  { %v663_v31 = vadd.f32 %v662_v20, %v622_v29  ;;  %v625_v32 = vadd.f32 %v2088_v30, %v584_v19  ;;  %v2319_v29 = vld [vmem:[%s3062_s13 + $0x8] sm:$0xff]   ;;  %v2320_v30 = vld [vmem:[%s3062_s13 + $0x10] sm:$0xff]  }
 0x124   :  { %v666_v33 = vadd.f32 %v665_v22, %v625_v32  ;;  %v669_v34 = vmax.f32 %v663_v31, 0.0  ;;  %v2321_v31 = vld [vmem:[%s3062_s13 + $0x18] sm:$0xff]   ;;  %v2324_v32 = vld [vmem:[%s3064_s15 + $0x4] ss:$28 sps:$4 sm:$0xff]  }
 0x126   :  { %v670_v35 = vmax.f32 %v666_v33, 0.0  ;;  %v2325_v33 = vld [vmem:[%s3064_s15 + $0x8] ss:$28 sps:$4 sm:$0xff]  }
 0x128   :  { %v671_v36 = vpack.c.bf16 %v670_v35, %v669_v34  ;;  %v2327_v34 = vld [vmem:[%s3064_s15 + $0xc] ss:$28 sps:$4 sm:$0xff]   ;;  %v2331_v35 = vld [vmem:[%s3064_s15 + $0x40] ss:$28 sps:$4 sm:$0xff]  }
 0x12a   :  { %2155 = vmatmul.mubr.bf16.vlgmr.msra.gmra.mrb[8].mxu1 %v671_v36  ;;  %v2333_v36 = vld [vmem:[%s3064_s15 + $0x44] ss:$28 sps:$4 sm:$0xff]  }
 0x12b   :  { %2172 = vmatprep.mubr.msk.bf16.mxu1 %vm2431_vm0, %v2430_v38  ;;  %2171 = vmatpush3.bf16.msra.mxu1 %v894_v51 }
 0x12c   :  { %2196 = vmatprep.subr.bf16.mxu1 %v2430_v38 }
 0x1fd   :  { %v777_v41 = vpop.f32.mrb[8].mxu1 }
 0x1fe   :  { %v778_v42 = vadd.f32 %v1906_v40, %v777_v41  ;;  %v2156_v43 = vpop.f32.mrb[9].mxu1  ;;  %v2343_v41 = vld [vmem:[%s3064_s15 + $0xb0] ss:$28 sps:$4 sm:$0xff]  }
 0x1ff   :  { %v780_v44 = vpop.f32.mrb[10].mxu1  ;;  %v2349_v43 = vld [vmem:[%s3064_s15 + $0xe8] ss:$28 sps:$4 sm:$0xff]  }
 0x200   :  { %v781_v45 = vadd.f32 %v1906_v40, %v780_v44  ;;  %v2157_v46 = vpop.f32.mrb[11].mxu1  ;;  %v784_v47 = vmax.f32 %v778_v42, 0.0  ;;  %v2345_v40 = vld [vmem:[%s3064_s15 + $0xb4] ss:$28 sps:$4 sm:$0xff]   ;;  %v2351_v42 = vld [vmem:[%s3064_s15 + $0xec] ss:$28 sps:$4 sm:$0xff]  }
 0x201   :  { %v2357_v44 = vld [vmem:[%s3064_s15 + $0x124] ss:$28 sps:$4 sm:$0xff]  }
 0x202   :  { %v785_v48 = vmax.f32 %v781_v45, 0.0  ;;  %v2355_v45 = vld [vmem:[%s3064_s15 + $0x120] ss:$28 sps:$4 sm:$0xff]  }
 0x203   :  { %v1933_v46 = vld [vmem:[%s3065_s12] ss:$0 sm:$0xff] }
 0x204   :  { %v786_v49 = vpack.c.bf16 %v785_v48, %v784_v47 }
 0x206   :  { %2167 = vmatmul.mubr.msk.bf16.vlgmr.msra.gmra.mrb[8].mxu0 %vm826_vm2, %v786_v49 }
 0x207   :  { %2192 = vmatprep.mubr.msk.bf16.mxu0 %vm2431_vm0, %v2430_v38  ;;  %2177 = vmatpush3.bf16.msra.mxu0 %v2309_v52 }
 0x208   :  { %2178 = vmatprep.subr.bf16.mxu0 %v2430_v38 }
 0x20b   :  { %2179 = vmatpush3.bf16.msra.mxu0 %v2310_v53 }
 0x20c   :  { %2180 = vmatprep.subr.bf16.mxu0 %v2430_v38 }
 0x20f   :  { %2181 = vmatpush3.bf16.msra.mxu0 %v2311_v54 }
 0x210   :  { %2182 = vmatprep.subr.bf16.mxu0 %v2430_v38 }
 0x213   :  { %2183 = vmatpush3.bf16.msra.mxu0 %v2312_v55  ;;  %v2322_v55 = vld [vmem:[%s3064_s15] ss:$28 sps:$4 sm:$0xff]  }
 0x214   :  { %2184 = vmatprep.subr.bf16.mxu0 %v2430_v38 }
 0x217   :  { %2185 = vmatpush3.bf16.msra.mxu0 %v2313_v56 }
 0x218   :  { %2186 = vmatprep.subr.bf16.mxu0 %v2430_v38 }
 0x21b   :  { %2187 = vmatpush3.bf16.msra.mxu0 %v2314_v57  ;;  %v2330_v57 = vld [vmem:[%s3064_s15 + $0x3c] ss:$28 sps:$4 sm:$0xff]  }
 0x21c   :  { %2188 = vmatprep.subr.bf16.mxu0 %v2430_v38 }
 0x21f   :  { %2189 = vmatpush3.bf16.msra.mxu0 %v2315_v4  ;;  %v2363_v4 = vld [vmem:[%s3064_s15 + $0x15c] ss:$28 sps:$4 sm:$0xff]  }
 0x220   :  { %2190 = vmatprep.subr.bf16.mxu0 %v2430_v38 }
 0x223   :  { %2191 = vmatpush3.bf16.msra.mxu0 %v2316_v5  ;;  %v2358_v5 = vld [vmem:[%s3064_s15 + $0x150] ss:$28 sps:$4 sm:$0xff]  }
 0x224   :  { %1637 = vmatprep.subr.bf16.mxu0 %v2327_v34  ;;  %v2388_v34 = vld [vmem:[%s3064_s15 + $0xf4] ss:$28 sps:$4 sm:$0xff]  }
 0x2d9   :  { %v864_v59 = vpop.f32.mrb[8].mxu0 }
 0x2da   :  { %v865_v60 = vadd.f32 %v1915_v58, %v864_v59  ;;  %v2168_v61 = vpop.f32.mrb[9].mxu0  ;;  %v2336_v59 = vld [vmem:[%s3064_s15 + $0x74] ss:$28 sps:$4 sm:$0xff]  }
 0x2db   :  { %v867_v62 = vpop.f32.mrb[10].mxu0  ;;  %v2342_v61 = vld [vmem:[%s3064_s15 + $0xac] ss:$28 sps:$4 sm:$0xff]  }
 0x2dc   :  { %v868_v63 = vadd.f32 %v1915_v58, %v867_v62  ;;  %v2169_v0 = vpop.f32.mrb[11].mxu0  ;;  %v871_v1 = vmax.f32 %v865_v60, 0.0  ;;  %v2328_v58 = vld [vmem:[%s3064_s15 + $0x38] ss:$28 sps:$4 sm:$0xff]   ;;  %v2334_v60 = vld [vmem:[%s3064_s15 + $0x70] ss:$28 sps:$4 sm:$0xff]  }
 0x2dd   :  { %v2340_v62 = vld [vmem:[%s3064_s15 + $0xa8] ss:$28 sps:$4 sm:$0xff]   ;;  %v2346_v0 = vld [vmem:[%s3064_s15 + $0xe0] ss:$28 sps:$4 sm:$0xff]  }
 0x2de   :  { %v872_v2 = vmax.f32 %v868_v63, 0.0  ;;  %v2348_v63 = vld [vmem:[%s3064_s15 + $0xe4] ss:$28 sps:$4 sm:$0xff]  }
 0x2e0   :  { %v873_v3 = vpack.c.bf16 %v872_v2, %v871_v1  ;;  %v2354_v1 = vld [vmem:[%s3064_s15 + $0x11c] ss:$28 sps:$4 sm:$0xff]  }
 0x2e1   :  { %v2352_v2 = vld [vmem:[%s3064_s15 + $0x118] ss:$28 sps:$4 sm:$0xff]  }
 0x2e2   :  { %2173 = vmatmul.mubr.msk.bf16.vlgmr.msra.gmra.mrb[12].mxu1 %vm888_vm4, %v873_v3  ;;  %v2360_v3 = vld [vmem:[%s3064_s15 + $0x154] ss:$28 sps:$4 sm:$0xff]  }
 0x2e3   :  { %2198 = vmatprep.mubr.msk.bf16.mxu1 %vm2431_vm0, %v2430_v38  ;;  %2197 = vmatpush3.bf16.msra.mxu1 %v1073_v17 }
 0x2e4   :  { %2202 = vmatprep.subr.bf16.mxu1 %v2430_v38 }
 0x3b5   :  { %v930_v7 = vpop.f32.mrb[12].mxu1 }
 0x3b6   :  { %v931_v8 = vadd.f32 %v1921_v6, %v930_v7  ;;  %v2174_v9 = vpop.f32.mrb[13].mxu1  ;;  %v2366_v7 = vld [vmem:[%s3064_s15 + $0x18c] ss:$28 sps:$4 sm:$0xff]  }
 0x3b7   :  { %v933_v10 = vpop.f32.mrb[14].mxu1  ;;  %v2364_v9 = vld [vmem:[%s3064_s15 + $0x188] ss:$28 sps:$4 sm:$0xff]  }
 0x3b8   :  { %v934_v11 = vadd.f32 %v1921_v6, %v933_v10  ;;  %v2175_v12 = vpop.f32.mrb[15].mxu1  ;;  %v937_v13 = vmax.f32 %v931_v8, 0.0  ;;  %v2361_v6 = vld [vmem:[%s3064_s15 + $0x158] ss:$28 sps:$4 sm:$0xff]   ;;  %v2367_v10 = vld [vmem:[%s3064_s15 + $0x190] ss:$28 sps:$4 sm:$0xff]  }
 0x3b9   :  { %v2369_v8 = vld [vmem:[%s3064_s15 + $0x194] ss:$28 sps:$4 sm:$0xff]   ;;  %v2432_v12 = vmov 0  }
 0x3ba   :  { %v938_v14 = vmax.f32 %v934_v11, 0.0  ;;  %v2372_v11 = vld [vmem:[%s3064_s15 + $0x14] ss:$28 sps:$4 sm:$0xff]  }
 0x3bc   :  { %v939_v15 = vpack.c.bf16 %v938_v14, %v937_v13  ;;  %v1936_v13 = vld [vmem:[%s3066_s14] ss:$0 sm:$0xff] }
 0x3be   :  { %2022 = vst [vmem:[%s3060_s18] sm:$0xff] %v939_v15   ;;  %2193 = vmatmul.mubr.bf16.vlgmr.msra.gmra.mrb[12].mxu0 %v939_v15 }
 0x3bf   :  { %1638 = vmatpush1.bf16.msra.mxu0 %v2325_v33  ;;  %1669 = vmatprep.mubr.bf16.mxu0 %v2432_v12  ;;  %v2385_v33 = vld [vmem:[%s3064_s15 + $0xc0] ss:$28 sps:$4 sm:$0xff]  }
 0x3c0   :  { %1639 = vmatprep.subr.bf16.mxu0 %v2333_v36  ;;  %v2389_v36 = vld [vmem:[%s3064_s15 + $0xf8] ss:$28 sps:$4 sm:$0xff]  }
 0x3c3   :  { %1640 = vmatpush1.bf16.msra.mxu0 %v2331_v35  ;;  %v2386_v35 = vld [vmem:[%s3064_s15 + $0xf0] ss:$28 sps:$4 sm:$0xff]  }
 0x3c4   :  { %1641 = vmatprep.subr.bf16.mxu0 %v2339_v37  ;;  %v2392_v37 = vld [vmem:[%s3064_s15 + $0x12c] ss:$28 sps:$4 sm:$0xff]  }
 0x3c7   :  { %1642 = vmatpush1.bf16.msra.mxu0 %v2337_v39  ;;  %v2390_v39 = vld [vmem:[%s3064_s15 + $0x128] ss:$28 sps:$4 sm:$0xff]  }
 0x3c8   :  { %1643 = vmatprep.subr.bf16.mxu0 %v2345_v40  ;;  %v2393_v40 = vld [vmem:[%s3064_s15 + $0x130] ss:$28 sps:$4 sm:$0xff]  }
 0x3cb   :  { %1644 = vmatpush1.bf16.msra.mxu0 %v2343_v41  ;;  %v2396_v41 = vld [vmem:[%s3064_s15 + $0x164] ss:$28 sps:$4 sm:$0xff]  }
 0x3cc   :  { %1645 = vmatprep.subr.bf16.mxu0 %v2351_v42  ;;  %v2394_v42 = vld [vmem:[%s3064_s15 + $0x160] ss:$28 sps:$4 sm:$0xff]  }
 0x3cf   :  { %1646 = vmatpush1.bf16.msra.mxu0 %v2349_v43  ;;  %v2397_v43 = vld [vmem:[%s3064_s15 + $0x168] ss:$28 sps:$4 sm:$0xff]  }
 0x3d0   :  { %1647 = vmatprep.subr.bf16.mxu0 %v2357_v44  ;;  %v2400_v44 = vld [vmem:[%s3064_s15 + $0x19c] ss:$28 sps:$4 sm:$0xff]  }
 0x3d3   :  { %1648 = vmatpush1.bf16.msra.mxu0 %v2355_v45  ;;  %v2398_v45 = vld [vmem:[%s3064_s15 + $0x198] ss:$28 sps:$4 sm:$0xff]  }
 0x3d4   :  { %1649 = vmatprep.subr.bf16.mxu0 %v2363_v4 }
 0x3d7   :  { %1650 = vmatpush1.bf16.msra.mxu0 %v2361_v6 }
 0x3d8   :  { %1651 = vmatprep.subr.bf16.mxu0 %v2369_v8 }
 0x3db   :  { %1652 = vmatpush1.bf16.msra.mxu0 %v2367_v10 }
 0x3dc   :  { %2214 = vmatprep.subr.bf16.mxu0 %v2430_v38 }
 0x491   :  { %v1045_v19 = vpop.f32.mrb[12].mxu0 }
 0x492   :  { %v1046_v20 = vadd.f32 %v1924_v18, %v1045_v19  ;;  %v2194_v21 = vpop.f32.mrb[13].mxu0 }
 0x493   :  { %v1048_v22 = vpop.f32.mrb[14].mxu0 }
 0x494   :  { %v1049_v23 = vadd.f32 %v1924_v18, %v1048_v22  ;;  %v2195_v24 = vpop.f32.mrb[15].mxu0  ;;  %v1052_v25 = vmax.f32 %v1046_v20, 0.0  ;;  %v2370_v22 = vld [vmem:[%s3064_s15 + $0x10] ss:$28 sps:$4 sm:$0xff]  }
 0x496   :  { %v1053_v26 = vmax.f32 %v1049_v23, 0.0  ;;  %v2373_v23 = vld [vmem:[%s3064_s15 + $0x18] ss:$28 sps:$4 sm:$0xff]  }
 0x498   :  { %v1054_v28 = vpack.c.bf16 %v1053_v26, %v1052_v25  ;;  %v2376_v25 = vld [vmem:[%s3064_s15 + $0x4c] ss:$28 sps:$4 sm:$0xff]  }
 0x499   :  { %v2374_v26 = vld [vmem:[%s3064_s15 + $0x48] ss:$28 sps:$4 sm:$0xff]  }
 0x49a   :  { %2199 = vmatmul.mubr.msk.bf16.vlgmr.msra.gmra.mrb[16].mxu1 %vm888_vm4, %v1054_v28  ;;  %v2380_v28 = vld [vmem:[%s3064_s15 + $0x84] ss:$28 sps:$4 sm:$0xff]  }
 0x49b   :  { %2203 = vmatpush3.bf16.msra.mxu1 %v2318_v27  ;;  %2210 = vmatprep.mubr.msk.bf16.mxu1 %vm2431_vm0, %v2430_v38  ;;  %v2377_v27 = vld [vmem:[%s3064_s15 + $0x50] ss:$28 sps:$4 sm:$0xff]  }
 0x49c   :  { %2204 = vmatprep.subr.bf16.mxu1 %v2430_v38 }
 0x49f   :  { %2205 = vmatpush3.bf16.msra.mxu1 %v2319_v29  ;;  %v2378_v29 = vld [vmem:[%s3064_s15 + $0x80] ss:$28 sps:$4 sm:$0xff]  }
 0x4a0   :  { %2206 = vmatprep.subr.bf16.mxu1 %v2430_v38 }
 0x4a3   :  { %2207 = vmatpush3.bf16.msra.mxu1 %v2320_v30  ;;  %v2381_v30 = vld [vmem:[%s3064_s15 + $0x88] ss:$28 sps:$4 sm:$0xff]  }
 0x4a4   :  { %2208 = vmatprep.subr.bf16.mxu1 %v2430_v38 }
 0x4a7   :  { %2209 = vmatpush3.bf16.msra.mxu1 %v2321_v31  ;;  %v2384_v31 = vld [vmem:[%s3064_s15 + $0xbc] ss:$28 sps:$4 sm:$0xff]  }
 0x4a8   :  { %1594 = vmatprep.subr.bf16.mxu1 %v2324_v32  ;;  %v2382_v32 = vld [vmem:[%s3064_s15 + $0xb8] ss:$28 sps:$4 sm:$0xff]  }
 0x56d   :  { %v1109_v47 = vpop.f32.mrb[16].mxu1 }
 0x56e   :  { %v1110_v48 = vadd.f32 %v1933_v46, %v1109_v47  ;;  %v2200_v49 = vpop.f32.mrb[17].mxu1  ;;  %v1271_v47 = vlaneseq }
 0x56f   :  { %v1112_v50 = vpop.f32.mrb[18].mxu1 }
 0x570   :  { %v1113_v51 = vadd.f32 %v1933_v46, %v1112_v50  ;;  %v2201_v52 = vpop.f32.mrb[19].mxu1  ;;  %v1116_v53 = vmax.f32 %v1110_v48, 0.0  ;;  %v2401_v46 = vld [vmem:[%s3064_s15 + $0x1a0] ss:$28 sps:$4 sm:$0xff]   ;;  %v1272_v48 = vshrl.u32 %v1271_v47, 7 }
 0x572   :  { %v1117_v54 = vmax.f32 %v1113_v51, 0.0  ;;  %v1273_v49 = vsub.s32 0, %v1272_v48  ;;  %v1281_v50 = vsub.s32 2, %v1272_v48  ;;  %v1269_v51 = vld [vmem:[%s3067_s16] sm:$0x7f]  ;;  %v1277_v52 = vsub.s32 1, %v1272_v48 }
 0x574   :  { %v1118_v56 = vpack.c.bf16 %v1117_v54, %v1116_v53  ;;  %v1285_v53 = vsub.s32 3, %v1272_v48  ;;  %v1274_v54 = vrot.slane %v1269_v51, %v1273_v49 }
 0x576   :  { %2211 = vmatmul.mubr.msk.bf16.vlgmr.msra.gmra.mrb[20].mxu1 %vm826_vm2, %v1118_v56  ;;  %v1278_v56 = vrot.slane %v1269_v51, %v1277_v52 }
 0x577   :  { %1595 = vmatpush1.bf16.msra.mxu1 %v2322_v55  ;;  %1626 = vmatprep.mubr.bf16.mxu1 %v2432_v12  ;;  %v1282_v55 = vrot.slane %v1269_v51, %v1281_v50 }
 0x578   :  { %1596 = vmatprep.subr.bf16.mxu1 %v2330_v57  ;;  %v1286_v57 = vrot.slane %v1269_v51, %v1285_v53 }
 0x57b   :  { %1597 = vmatpush1.bf16.msra.mxu1 %v2328_v58 }
 0x57c   :  { %1598 = vmatprep.subr.bf16.mxu1 %v2336_v59 }
 0x57f   :  { %1599 = vmatpush1.bf16.msra.mxu1 %v2334_v60 }
 0x580   :  { %1600 = vmatprep.subr.bf16.mxu1 %v2342_v61 }
 0x583   :  { %1601 = vmatpush1.bf16.msra.mxu1 %v2340_v62 }
 0x584   :  { %1602 = vmatprep.subr.bf16.mxu1 %v2348_v63 }
 0x587   :  { %1603 = vmatpush1.bf16.msra.mxu1 %v2346_v0 }
 0x588   :  { %1604 = vmatprep.subr.bf16.mxu1 %v2354_v1 }
 0x58b   :  { %1605 = vmatpush1.bf16.msra.mxu1 %v2352_v2 }
 0x58c   :  { %1606 = vmatprep.subr.bf16.mxu1 %v2360_v3 }
 0x58f   :  { %1607 = vmatpush1.bf16.msra.mxu1 %v2358_v5 }
 0x590   :  { %1608 = vmatprep.subr.bf16.mxu1 %v2366_v7 }
 0x593   :  { %1609 = vmatpush1.bf16.msra.mxu1 %v2364_v9 }
 0x594   :  { %1680 = vmatprep.subr.bf16.mxu1 %v2372_v11 }
 0x649   :  { %v1195_v14 = vpop.f32.mrb[20].mxu1 }
 0x64a   :  { %v1196_v15 = vadd.f32 %v1936_v13, %v1195_v14  ;;  %v2212_v16 = vpop.f32.mrb[21].mxu1 }
 0x64b   :  { %v1198_v17 = vpop.f32.mrb[22].mxu1 }
 0x64c   :  { %v1199_v18 = vadd.f32 %v1936_v13, %v1198_v17  ;;  %v2213_v19 = vpop.f32.mrb[23].mxu1  ;;  %v1202_v20 = vmax.f32 %v1196_v15, 0.0 }
 0x64e   :  { %v1203_v21 = vmax.f32 %v1199_v18, 0.0 }
 0x650   :  { %v1204_v24 = vpack.c.bf16 %v1203_v21, %v1202_v20  ;;  %v1289_v21 = vsub.s32 4, %v1272_v48 }
 0x652   :  { %1627 = vmatmul.mubr.bf16.vlgmr.msra.gmra.mrb[24].mxu1 %v1204_v24  ;;  %1670 = vmatmul.mubr.bf16.vlgmr.msra.gmra.mrb[16].mxu0 %v1204_v24 }
 0x653   :  { %1681 = vmatpush1.bf16.msra.mxu1 %v2370_v22  ;;  %2215 = vmatpush3.bf16.msra.mxu0 %v2373_v23  ;;  %v1297_v22 = vsub.s32 6, %v1272_v48  ;;  %v1293_v23 = vsub.s32 5, %v1272_v48 }
 0x654   :  { %1682 = vmatprep.subr.bf16.mxu1 %v2376_v25  ;;  %2216 = vmatprep.subr.bf16.mxu0 %v2430_v38 }
 0x655   :  { %1712 = vmatprep.mubr.bf16.mxu1 %v2432_v12  ;;  %2230 = vmatprep.mubr.msk.bf16.mxu0 %vm2431_vm0, %v2430_v38  ;;  %v1298_v25 = vrot.slane %v1269_v51, %v1297_v22 }
 0x657   :  { %1683 = vmatpush1.bf16.msra.mxu1 %v2374_v26  ;;  %2217 = vmatpush3.bf16.msra.mxu0 %v2377_v27  ;;  %v1294_v26 = vrot.slane %v1269_v51, %v1293_v23 }
 0x658   :  { %1684 = vmatprep.subr.bf16.mxu1 %v2380_v28  ;;  %2218 = vmatprep.subr.bf16.mxu0 %v2430_v38 }
 0x65b   :  { %1685 = vmatpush1.bf16.msra.mxu1 %v2378_v29  ;;  %2219 = vmatpush3.bf16.msra.mxu0 %v2381_v30 }
 0x65c   :  { %1686 = vmatprep.subr.bf16.mxu1 %v2384_v31  ;;  %2220 = vmatprep.subr.bf16.mxu0 %v2430_v38 }
 0x65f   :  { %1687 = vmatpush1.bf16.msra.mxu1 %v2382_v32  ;;  %2221 = vmatpush3.bf16.msra.mxu0 %v2385_v33 }
 0x660   :  { %1688 = vmatprep.subr.bf16.mxu1 %v2388_v34  ;;  %2222 = vmatprep.subr.bf16.mxu0 %v2430_v38 }
 0x663   :  { %1689 = vmatpush1.bf16.msra.mxu1 %v2386_v35  ;;  %2223 = vmatpush3.bf16.msra.mxu0 %v2389_v36 }
 0x664   :  { %1690 = vmatprep.subr.bf16.mxu1 %v2392_v37  ;;  %2224 = vmatprep.subr.bf16.mxu0 %v2430_v38 }
 0x667   :  { %1691 = vmatpush1.bf16.msra.mxu1 %v2390_v39  ;;  %2225 = vmatpush3.bf16.msra.mxu0 %v2393_v40 }
 0x668   :  { %1692 = vmatprep.subr.bf16.mxu1 %v2396_v41  ;;  %2226 = vmatprep.subr.bf16.mxu0 %v2430_v38 }
 0x66b   :  { %1693 = vmatpush1.bf16.msra.mxu1 %v2394_v42  ;;  %2227 = vmatpush3.bf16.msra.mxu0 %v2397_v43 }
 0x66c   :  { %1694 = vmatprep.subr.bf16.mxu1 %v2400_v44  ;;  %2228 = vmatprep.subr.bf16.mxu0 %v2430_v38 }
 0x66f   :  { %1695 = vmatpush1.bf16.msra.mxu1 %v2398_v45  ;;  %2229 = vmatpush3.bf16.msra.mxu0 %v2401_v46 }
 0x672   :  { %1713 = vmatmul.mubr.bf16.vlgmr.msra.gmra.mrb[28].mxu1 %v1204_v24  ;;  %2231 = vmatmul.mubr.bf16.vlgmr.msra.gmra.mrb[20].mxu0 %v1204_v24  ;;  %v1290_v24 = vrot.slane %v1269_v51, %v1289_v21 }
 0x725   :  { %v1628_v58 = vpop.f32.mrb[24].mxu1  ;;  %v1671_v38 = vpop.f32.mrb[16].mxu0 }
 0x726   :  { %v1629_v59 = vadd.f32 %v1628_v58, %v1274_v54  ;;  %v1672_v60 = vadd.f32 %v1671_v38, %v1282_v55  ;;  %v1630_v61 = vpop.f32.mrb[25].mxu1  ;;  %v1673_v62 = vpop.f32.mrb[17].mxu0 }
 0x727   :  { %v1631_v63 = vadd.f32 %v1630_v61, %v1278_v56  ;;  %v1674_v0 = vadd.f32 %v1673_v62, %v1286_v57  ;;  %v1632_v1 = vpop.f32.mrb[26].mxu1  ;;  %v1675_v2 = vpop.f32.mrb[18].mxu0 }
 0x728   :  { %2402 = vtanh.f32 %v1629_v59  ;;  %v1633_v3 = vadd.f32 %v1632_v1, %v1274_v54  ;;  %v1634_v4 = vpop.f32.mrb[27].mxu1  ;;  %v1677_v5 = vpop.f32.mrb[19].mxu0  ;;  %v1676_v6 = vadd.f32 %v1675_v2, %v1282_v55 }
 0x729   :  { %2404 = vtanh.f32 %v1672_v60  ;;  %v1635_v7 = vadd.f32 %v1634_v4, %v1278_v56  ;;  %v1678_v8 = vadd.f32 %v1677_v5, %v1286_v57 }
 0x72a   :  { %2406 = vtanh.f32 %v1631_v63 }
 0x72b   :  { %2408 = vtanh.f32 %v1674_v0 }
 0x72c   :  { %2410 = vtanh.f32 %v1633_v3 }
 0x72d   :  { %2412 = vtanh.f32 %v1676_v6 }
 0x72e   :  { %2414 = vtanh.f32 %v1635_v7 }
 0x72f   :  { %2416 = vtanh.f32 %v1678_v8 }
 0x732   :  { %v2403_v9 = vpop.eup %2402 }
 0x733   :  { %v2405_v10 = vpop.eup %2404 }
 0x734   :  { %v2407_v11 = vpop.eup %2406 }
 0x735   :  { %v2409_v12 = vpop.eup %2408  ;;  %v2008_v13 = vpack.c.bf16 %v2407_v11, %v2403_v9 }
 0x736   :  { %v2411_v14 = vpop.eup %2410  ;;  %v2009_v15 = vpack.c.bf16 %v2409_v12, %v2405_v10 }
 0x737   :  { %v2413_v16 = vpop.eup %2412  ;;  %1822 = vst [vmem:[%s3068_s17] sm:$0xff] %v2008_v13 }
 0x738   :  { %v2415_v17 = vpop.eup %2414  ;;  %1823 = vst [vmem:[%s3068_s17 + $0x8] sm:$0xff] %v2009_v15 }
 0x739   :  { %v2417_v18 = vpop.eup %2416  ;;  %v2012_v19 = vpack.c.bf16 %v2415_v17, %v2411_v14 }
 0x73a   :  { %v2013_v20 = vpack.c.bf16 %v2417_v18, %v2413_v16 }
 0x73b   :  { %1827 = vst [vmem:[%s3068_s17 + $0x1c] sm:$0xff] %v2012_v19 }
 0x73c   :  { %1828 = vst [vmem:[%s3068_s17 + $0x24] sm:$0xff] %v2013_v20 }
 0x745   :  { %v1714_v27 = vpop.f32.mrb[28].mxu1  ;;  %v1757_v28 = vpop.f32.mrb[20].mxu0 }
 0x746   :  { %v1715_v29 = vadd.f32 %v1714_v27, %v1290_v24  ;;  %v1758_v30 = vadd.f32 %v1757_v28, %v1298_v25  ;;  %v1716_v31 = vpop.f32.mrb[29].mxu1  ;;  %v2232_v32 = vpop.f32.mrb[21].mxu0 }
 0x747   :  { %v1717_v33 = vadd.f32 %v1716_v31, %v1294_v26  ;;  %v1718_v34 = vpop.f32.mrb[30].mxu1  ;;  %v1760_v35 = vpop.f32.mrb[22].mxu0 }
 0x748   :  { %2418 = vtanh.f32 %v1715_v29  ;;  %v1719_v36 = vadd.f32 %v1718_v34, %v1290_v24  ;;  %v1761_v37 = vadd.f32 %v1760_v35, %v1298_v25  ;;  %v1720_v39 = vpop.f32.mrb[31].mxu1  ;;  %v2233_v40 = vpop.f32.mrb[23].mxu0 }
 0x749   :  { %2420 = vtanh.f32 %v1758_v30  ;;  %v1721_v41 = vadd.f32 %v1720_v39, %v1294_v26 }
 0x74a   :  { %2422 = vtanh.f32 %v1717_v33 }
 0x74b   :  { %2424 = vtanh.f32 %v1719_v36 }
 0x74c   :  { %2426 = vtanh.f32 %v1761_v37 }
 0x74d   :  { %2428 = vtanh.f32 %v1721_v41 }
 0x752   :  { %v2419_v42 = vpop.eup %2418 }
 0x753   :  { %v2421_v43 = vpop.eup %2420 }
 0x754   :  { %v2423_v44 = vpop.eup %2422  ;;  %v2011_v45 = vpack.c.bf16 %v2421_v43, %v2421_v43 }
 0x755   :  { %v2425_v46 = vpop.eup %2424  ;;  %v2010_v47 = vpack.c.bf16 %v2423_v44, %v2419_v42 }
 0x756   :  { %v2427_v48 = vpop.eup %2426  ;;  %1826 = vst.msk [vmem:[%s3068_s17 + $0x18] sm:$0xf] %vm1825_vm5, %v2011_v45 }
 0x757   :  { %v2429_v49 = vpop.eup %2428  ;;  %1824 = vst [vmem:[%s3068_s17 + $0x10] sm:$0xff] %v2010_v47  ;;  %v2015_v50 = vpack.c.bf16 %v2427_v48, %v2427_v48 }
 0x758   :  { %v2014_v51 = vpack.c.bf16 %v2429_v49, %v2425_v46 }
 0x759   :  { %1830 = vst.msk [vmem:[%s3068_s17 + $0x34] sm:$0xf] %vm1825_vm5, %v2015_v50 }
 0x75a   :  { %1829 = vst [vmem:[%s3068_s17 + $0x2c] sm:$0xff] %v2014_v51 }

</bundles_post_ra>
